<compile_context>
chip_gen: v7x
topology: tpu7x:2x2x1
jax: 0.10.0
libtpu: 0.0.40
codegen_flags: <defaults>
</compile_context>

<pallas_src>
import jax
import jax.numpy as jnp
from jax.experimental import pallas as pl
from jax.experimental.pallas import tpu as pltpu

_LANE = 128  # TPU lane width; last block dim and output lanes are kept 128-dense.


def _distmult_kernel(rel_ref, x_row_ref, x_col_ref, o_ref, acc_ref):
    # rel_ref:   (1,  tk)  slice of the relation diagonal
    # x_row_ref: (tm, tk)  row block, feature slice k
    # x_col_ref: (tn, tk)  column block (rows of inputs used as inputs.T cols)
    # o_ref:     (tm, tn)  output tile
    # acc_ref:   (tm, tn)  f32 accumulator, resident across the K axis
    k = pl.program_id(2)

    @pl.when(k == 0)
    def _():
        acc_ref[...] = jnp.zeros_like(acc_ref)

    # inputs @ diag(relation)  ==  per-feature scaling of the row block (VPU).
    xr_scaled = x_row_ref[...] * rel_ref[...]

    # (x_row * rel) @ x_col.T — contract both operands on the feature axis so
    # the MXU is fed directly (no materialized transpose of the column block).
    acc_ref[...] += jax.lax.dot_general(
        xr_scaled, x_col_ref[...],
        dimension_numbers=(((1,), (1,)), ((), ())),
        preferred_element_type=jnp.float32,
    )

    @pl.when(k == pl.num_programs(2) - 1)
    def _():
        # self.act defaults to identity (lambda x: x).
        o_ref[...] = acc_ref[...].astype(o_ref.dtype)


def _round_up(v: int, m: int) -> int:
    return (v + m - 1) // m * m


def _vmem_budget_bytes() -> int:
    """Per-core VMEM budget with headroom; conservative 64 MiB (v7x) fallback."""
    phys = 64 << 20
    try:
        info = pltpu.get_tpu_info()
        phys = int(getattr(info, "vmem_capacity_bytes", phys))
    except Exception:
        pass
    return (phys * 3) // 4  # leave headroom for compiler scratch


def _select_tiles(n_pad: int, d_pad: int, in_bytes: int, out_bytes: int,
                  budget: int):
    """Pick (tm, tn, tk) fitting the VMEM budget.

    Preference order: >= 2 parallel (i, j) blocks (keeps both v7x TensorCores
    busy), then large tm (halves column-panel re-streaming), then large tn
    (lane-dense output, fewer grid steps), then large tk (MXU depth).
    """
    n_cands = [t for t in (512, 256, 128) if t <= n_pad and n_pad % t == 0]
    if not n_cands:
        n_cands = [n_pad]
    k_cap = min(d_pad, 2048)
    k_cands = [t for t in range(k_cap, 0, -_LANE) if d_pad % t == 0]
    if not k_cands:
        k_cands = [d_pad]

    def footprint(tm, tn, tk):
        dma_in = 2 * (tm + tn + 1) * tk * in_bytes   # double-buffered input panels
        dma_out = 2 * tm * tn * out_bytes            # double-buffered output tile
        acc = tm * tn * 4                            # f32 accumulator scratch
        return dma_in + dma_out + acc

    for need_parallel in (True, False):
        for tm in n_cands:
            for tn in n_cands:
                if need_parallel and (n_pad // tm) * (n_pad // tn) < 2:
                    continue
                for tk in k_cands:
                    if footprint(tm, tn, tk) <= budget:
                        return tm, tn, tk
    return n_cands[-1], n_cands[-1], k_cands[-1]


def distmult_decoder(x: jax.Array, relation: jax.Array) -> jax.Array:
    """Pallas implementation of DistMultDecoder.forward.

    Args:
      x:        (N, D) node-embedding matrix (f32 or bf16).
      relation: (D,) relation vector (diagonal of the relation matrix).

    Returns:
      (N, N) matrix act((x @ diag(relation)) @ x.T) with act = identity.
    """
    N, D = x.shape
    assert relation.shape == (D,), "relation must have shape (input_dim,)"

    # Pad to lane-dense sizes: zero rows/features contribute exactly 0.
    n_pad = max(_round_up(N, _LANE), _LANE)
    d_pad = max(_round_up(D, _LANE), _LANE)

    xp = x
    if n_pad != N or d_pad != D:
        xp = jnp.pad(x, ((0, n_pad - N), (0, d_pad - D)))
    rel = relation.astype(x.dtype)
    if d_pad != D:
        rel = jnp.pad(rel, (0, d_pad - D))
    rel2d = rel.reshape(1, d_pad)

    in_bytes = xp.dtype.itemsize
    out_bytes = jnp.dtype(x.dtype).itemsize
    budget = _vmem_budget_bytes()
    tm, tn, tk = _select_tiles(n_pad, d_pad, in_bytes, out_bytes, budget)

    grid = (n_pad // tm, n_pad // tn, d_pad // tk)

    cost = pl.CostEstimate(
        flops=2 * n_pad * n_pad * d_pad,
        transcendentals=0,
        bytes_accessed=(n_pad * d_pad * in_bytes * (1 + n_pad // tm)
                        + n_pad * n_pad * out_bytes),
    )

    out = pl.pallas_call(
        _distmult_kernel,
        out_shape=jax.ShapeDtypeStruct((n_pad, n_pad), x.dtype),
        grid=grid,
        in_specs=[
            # relation slice: depends only on the reduction axis k
            pl.BlockSpec((1, tk), lambda i, j, k: (0, k)),
            # row block: (i, k) — independent of j
            pl.BlockSpec((tm, tk), lambda i, j, k: (i, k)),
            # column block: (j, k) — independent of i
            pl.BlockSpec((tn, tk), lambda i, j, k: (j, k)),
        ],
        out_specs=pl.BlockSpec((tm, tn), lambda i, j, k: (i, j)),
        scratch_shapes=[pltpu.VMEM((tm, tn), jnp.float32)],
        compiler_params=pltpu.CompilerParams(
            dimension_semantics=("parallel", "parallel", "arbitrary"),
            vmem_limit_bytes=int(budget),
        ),
        cost_estimate=cost,
    )(rel2d, xp, xp)

    if n_pad != N:
        out = out[:N, :N]
    return out


def distmult_decoder_ref(x: jax.Array, relation: jax.Array) -> jax.Array:
    """Pure-JAX reference for correctness check."""
    scaled = x * relation[None, :].astype(x.dtype)
    return scaled @ x.T


def xavier_uniform_relation(key, input_dim: int, dtype=jnp.float32) -> jax.Array:
    """Matches nn.init.xavier_uniform_ on a (input_dim, 1) tensor, then .view(-1).

    For a 2-D (input_dim, 1) tensor: fan_in = 1, fan_out = input_dim,
    bound = sqrt(6 / (fan_in + fan_out)).
    """
    bound = (6.0 / (1.0 + input_dim)) ** 0.5
    tmp = jax.random.uniform(key, (input_dim, 1), dtype=dtype,
                             minval=-bound, maxval=bound)
    return tmp.reshape(-1)


if __name__ == "__main__":
    key = jax.random.PRNGKey(0)
    k_x, k_rel = jax.random.split(key)

    # Small shapes consistent with the module: N nodes, D-dim embeddings.
    N, D = 256, 64
    x = jax.random.normal(k_x, (N, D), dtype=jnp.float32)
    relation = xavier_uniform_relation(k_rel, D)

    out = jax.block_until_ready(distmult_decoder(x, relation))

    ref = distmult_decoder_ref(x, relation)
    assert out.shape == (N, N)
    assert jnp.allclose(out, ref, atol=5e-3, rtol=5e-3), "mismatch vs reference"

    print("KERNEL_OK")
</pallas_src>

<mosaic_0001>
module attributes {stable_mosaic.version = 11 : i64} {
  func.func @_distmult_kernel(%arg0: i32, %arg1: i32, %arg2: i32, %arg3: memref<1x128xf32, #tpu.memory_space<vmem>>, %arg4: memref<256x128xf32, #tpu.memory_space<vmem>>, %arg5: memref<128x128xf32, #tpu.memory_space<vmem>>, %arg6: memref<256x128xf32, #tpu.memory_space<vmem>>, %arg7: memref<256x128xf32, #tpu.memory_space<vmem>>) attributes {dimension_semantics = [#tpu.dimension_semantics<parallel>, #tpu.dimension_semantics<parallel>, #tpu.dimension_semantics<arbitrary>], iteration_bounds = array<i64: 1, 2, 1>, scalar_prefetch = 0 : i64, scratch_operands = 1 : i64, tpu.core_type = #tpu.core_type<tc>, window_params = [{transform_indices = @transform_0, window_bounds = array<i64: 1, 128>}, {transform_indices = @transform_1, window_bounds = array<i64: 256, 128>}, {transform_indices = @transform_2, window_bounds = array<i64: 128, 128>}, {transform_indices = @transform_3, window_bounds = array<i64: 256, 128>}]} {
    %c0_i32 = arith.constant 0 : i32
    %0 = arith.cmpi eq, %arg2, %c0_i32 : i32
    %1 = arith.extui %0 : i1 to i32
    %c0_i32_0 = arith.constant 0 : i32
    %2 = arith.cmpi ne, %1, %c0_i32_0 : i32
    scf.if %2 {
      %cst_12 = arith.constant 0.000000e+00 : f32
      %15 = vector.broadcast %cst_12 : f32 to vector<256x128xf32>
      %c0_13 = arith.constant 0 : index
      %c0_14 = arith.constant 0 : index
      %16 = vector.load %arg7[%c0_13, %c0_14] : memref<256x128xf32, #tpu.memory_space<vmem>>, vector<256x128xf32>
      tpu.vector_store %arg7[%c0_13, %c0_14], %15 {strides = array<i32>} : memref<256x128xf32, #tpu.memory_space<vmem>>, vector<256x128xf32>,
    } else {
    }
    %c0 = arith.constant 0 : index
    %c0_1 = arith.constant 0 : index
    %3 = vector.load %arg4[%c0, %c0_1] : memref<256x128xf32, #tpu.memory_space<vmem>>, vector<256x128xf32>
    %c0_2 = arith.constant 0 : index
    %c0_3 = arith.constant 0 : index
    %4 = vector.load %arg3[%c0_2, %c0_3] : memref<1x128xf32, #tpu.memory_space<vmem>>, vector<1x128xf32>
    %5 = vector.broadcast %4 : vector<1x128xf32> to vector<256x128xf32>
    %6 = arith.mulf %3, %5 : vector<256x128xf32>
    %c0_4 = arith.constant 0 : index
    %c0_5 = arith.constant 0 : index
    %7 = vector.load %arg7[%c0_4, %c0_5] : memref<256x128xf32, #tpu.memory_space<vmem>>, vector<256x128xf32>
    %c0_6 = arith.constant 0 : index
    %c0_7 = arith.constant 0 : index
    %8 = vector.load %arg5[%c0_6, %c0_7] : memref<128x128xf32, #tpu.memory_space<vmem>>, vector<128x128xf32>
    %cst = arith.constant dense<0.000000e+00> : vector<256x128xf32>
    %9 = tpu.matmul %6, %8, %cst {dimension_numbers = #tpu.dot_dimension_numbers<[1], [1], [0], [0], [0, 0, 1, 0], [], []>} : vector<256x128xf32>, vector<128x128xf32>, vector<256x128xf32> -> vector<256x128xf32>
    %10 = arith.addf %7, %9 : vector<256x128xf32>
    %c0_8 = arith.constant 0 : index
    %c0_9 = arith.constant 0 : index
    %11 = vector.load %arg7[%c0_8, %c0_9] : memref<256x128xf32, #tpu.memory_space<vmem>>, vector<256x128xf32>
    tpu.vector_store %arg7[%c0_8, %c0_9], %10 {strides = array<i32>} : memref<256x128xf32, #tpu.memory_space<vmem>>, vector<256x128xf32>,
    %c0_i32_10 = arith.constant 0 : i32
    %12 = arith.cmpi eq, %arg2, %c0_i32_10 : i32
    %13 = arith.extui %12 : i1 to i32
    %c0_i32_11 = arith.constant 0 : i32
    %14 = arith.cmpi ne, %13, %c0_i32_11 : i32
    scf.if %14 {
      %c0_12 = arith.constant 0 : index
      %c0_13 = arith.constant 0 : index
      %15 = vector.load %arg7[%c0_12, %c0_13] : memref<256x128xf32, #tpu.memory_space<vmem>>, vector<256x128xf32>
      %c0_14 = arith.constant 0 : index
      %c0_15 = arith.constant 0 : index
      %16 = vector.load %arg6[%c0_14, %c0_15] : memref<256x128xf32, #tpu.memory_space<vmem>>, vector<256x128xf32>
      tpu.vector_store %arg6[%c0_14, %c0_15], %15 {strides = array<i32>} : memref<256x128xf32, #tpu.memory_space<vmem>>, vector<256x128xf32>,
    } else {
    }
    return
  }
  func.func @transform_0(%arg0: i32, %arg1: i32, %arg2: i32) -> (i32, i32) {
    %c0_i32 = arith.constant 0 : i32
    %c0_i32_0 = arith.constant 0 : i32
    return %c0_i32, %arg2 : i32, i32
  }
  func.func @transform_1(%arg0: i32, %arg1: i32, %arg2: i32) -> (i32, i32) {
    %c0_i32 = arith.constant 0 : i32
    return %arg0, %arg2 : i32, i32
  }
  func.func @transform_2(%arg0: i32, %arg1: i32, %arg2: i32) -> (i32, i32) {
    %c0_i32 = arith.constant 0 : i32
    return %arg1, %arg2 : i32, i32
  }
  func.func @transform_3(%arg0: i32, %arg1: i32, %arg2: i32) -> (i32, i32) {
    %c0_i32 = arith.constant 0 : i32
    return %arg0, %arg1 : i32, i32
  }
}

</mosaic_0001>

<bundles_post_ra>
// kernel: tpu_custom_call.1
= control target key start
LH: loop header
LB: loop body
LE: loop exit
PB: predicated region body
PF: predicated region fallthrough
CT: control target
= control target key end

     0   :  { %8 = vsyncpa [#allocation4], 0  ;;  %s1743_s0 = inlined_call_operand.hbm [shape: f32[1,128], index: 0, kind: input, shape index: {}]   ;;  %s1744_s1 = inlined_call_operand.hbm [shape: f32[256,128], index: 1, kind: input, shape index: {}]   ;;  %s1745_s2 = inlined_call_operand.hbm [shape: f32[256,128], index: 2, kind: input, shape index: {}]   ;;  %s1746_s3 = inlined_call_operand.hbm [shape: f32[256,256], index: 3, kind: output, shape index: {}]  }
   0x1   :  { %9 = vsyncpa [#allocation7], 0 }
   0x2   :  { %10 = vsyncpa [#allocation5], 0 }
   0x3   :  { %12 = vsyncpa [#allocation5 + $0x1], 0  ;;  %s1390_s12 = smov 0   ;;  %s1392_s13 = smov 0  }
   0x4   :  { %s1394_s14 = smov 0   ;;  %s1396_s15 = smov 0  }
   0x5   :  { %s1398_s16 = smov 0   ;;  %s1400_s17 = smov 0  }
   0x6 LB: > { %s1421_s18 = sadd.s32 4294967295, %s1359_s17   ;;  %s900_s19 = sadd.s32 4294967294, %s1359_s17   ;;  %s1359_s17 = sphi %s1400_s17, %s18_s17   ;;  %s1355_s16 = sphi %s1398_s16, %s1775_s16   ;;  %s1351_s15 = sphi %s1396_s15, %s1774_s15   ;;  %s1347_s14 = sphi %s1394_s14, %s1773_s14   ;;  %s1343_s13 = sphi %s1392_s13, %s1772_s13   ;;  %s1339_s12 = sphi %s1390_s12, %s1771_s12  }
   0x7   : > { %p107_p0 = scmp.ne.s32.totalorder %s1347_s14, %s1343_s13  ;;  %p108_p1 = scmp.eq.s32.totalorder %s1359_s17, 0 }
   0x8   : > { %p113_p2 = scmp.ne.s32.totalorder %s1343_s13, %s1339_s12  ;;  %p1747_p3 = scmp.eq.s32.totalorder %s1421_s18, 0 }
   0x9   : > { %p139_p4 = scmp.eq.s32.totalorder %s1421_s18, 1  ;;  %p1432_p5 = por %p108_p1, %p107_p0 }
   0xa   : > { %p145_p6 = scmp.eq.s32.totalorder %s900_s19, 1  ;;  %p1438_p7 = por %p1747_p3, %p113_p2 }
   0xb   : > { %p1442_p8 = por %p139_p4, %p107_p0  ;;  %p901_p10 = scmp.ge.s32.totalorder %s1359_s17, 1 }
   0xc   : > { %s1753_s22 = scalar_select %p1438_p7, 1, 0 }
   0xd   : > { %s1754_s23 = scalar_select %p1442_p8, 1, 0 }
   0xe   : > { %p1446_p9 = por %p145_p6, %p113_p2  ;;  %p152_p11 = scmp.lt.s32.totalorder %s1359_s17, 3 }
   0xf   : > { %s1361_s26 = smov [#allocation3]   ;;  %p1124_p1 = scmp.lt.s32.totalorder %s1359_s17, 2 }
  0x10   : > { %s1755_s24 = scalar_select %p1446_p9, 1, 0 }
  0x11   : > { %p1453_p13 = pnand %p901_p10, %p152_p11  ;;  %s167_s27 = sshll.u32 %s1361_s26, 4  ;;  %s168_s27 = int_to_ptr.vmem [resolvable:$true] %s167_s27 }
  0x12   : > { %p1462_p4 = pnand %p1124_p1, %p1432_p5  ;;  %s1362_s29 = smov [#allocation6]  }
  0x13   : > { %s1756_s25 = scalar_select %p1453_p13, 1, 0 }
  0x14   : > { %p1107_p0 = pneg %p1453_p13  ;;  %s181_s30 = sshll.u32 %s1362_s29, 4  ;;  %s1472_s30 = int_to_ptr.vmem [resolvable:$true] %s181_s30 }
  0x15   : > { %s1757_s28 = scalar_select %p1462_p4, 1, 0 }
  0x16   : > { %p1468_p2 = pnand %p1107_p0, %p1747_p3  ;;  %s1183_s7 = scalar_lea.hbm %s1743_s0, 16 }
  0x17   : > { %p1184_p5 = scmp.ne.s32.totalorder %s1743_s0, %s1183_s7  ;;  %p1190_p1 = scmp.lt.u32.totalorder %s1183_s7, %s1743_s0 }
  0x18   : > { %p1185_p6 = pneg %p1468_p2 }
  0x1a   : > { %p1186_p10 = pnand %p1185_p6, %p1184_p5 }
  0x1c   : > { %p1187_p11 = pneg %p1186_p10 }
  0x1e   : > { %p1192_p0 = pnand %p1190_p1, %p1187_p11 }
  0x20   : > { %1195 = shalt.err (!%p1192_p0)
}
  0x21   : > { %s1196_s19 = scalar_lea.vmem %s168_s27, 16  ;;  %s1203_s21 = scalar_lea.vmem %s168_s27, 32 }
  0x22   : > { %p1197_p12 = scmp.ne.s32.totalorder %s168_s27, %s1196_s19  ;;  %p1204_p8 = scmp.lt.s32.totalorder %s168_s27, %s168_s27 }
  0x23   : > { %p1205_p7 = scmp.lt.s32.totalorder %s1203_s21, %s1196_s19 }
  0x24   : > { %p1199_p3 = pnand %p1197_p12, %p1185_p6 }
  0x25   : > { %p1206_p13 = por %p1205_p7, %p1204_p8 }
  0x26   : > { %p1200_p9 = pneg %p1199_p3 }
  0x28   : > { %p1207_p4 = pnand %p1206_p13, %p1200_p9 }
  0x2a   : > { %1210 = shalt.err (!%p1207_p4)
}
  0x2b   : > { %1110 = dma.hbm_to_vmem [thread:$0]  (!%p1468_p2), %s1743_s0, 16, %s168_s27, [#allocation4]  }
  0x2c   : > { %s1211_s7 = scalar_lea.hbm %s1744_s1, 4096 }
  0x2d   : > { %p1212_p3 = scmp.ne.s32.totalorder %s1744_s1, %s1211_s7  ;;  %p1218_p9 = scmp.lt.u32.totalorder %s1211_s7, %s1744_s1 }
  0x2f   : > { %p1214_p7 = pnand %p1212_p3, %p1185_p6 }
  0x31   : > { %p1215_p8 = pneg %p1214_p7 }
  0x33   : > { %p1220_p12 = pnand %p1218_p9, %p1215_p8 }
  0x35   : > { %1223 = shalt.err (!%p1220_p12)
}
  0x36   : > { %s1224_s27 = scalar_lea.vmem %s1472_s30, 4096  ;;  %p1232_p10 = scmp.lt.s32.totalorder %s1472_s30, %s1472_s30 }
  0x37   : > { %p1225_p13 = scmp.ne.s32.totalorder %s1472_s30, %s1224_s27  ;;  %p1233_p11 = scmp.lt.s32.totalorder %s1224_s27, %s1224_s27 }
  0x39   : > { %p1227_p4 = pnand %p1225_p13, %p1185_p6  ;;  %p1234_p1 = por %p1233_p11, %p1232_p10 }
  0x3b   : > { %p1228_p5 = pneg %p1227_p4 }
  0x3d   : > { %p1235_p0 = pnand %p1234_p1, %p1228_p5 }
  0x3f   : > { %1238 = shalt.err (!%p1235_p0)
}
  0x40   : > { %s1363_s19 = smov 128   ;;  %s1364_s21 = smov 8  }
  0x41   : > { %1113 = dma.hbm_to_vmem [thread:$0]  (!%p1468_p2), %s1744_s1, 4096, %s1472_s30, [#allocation7], %s1363_s19, %s1363_s19, %s1364_s21  }
  0x42   : > { %s195_s5 = sand.u32 1, %s1359_s17   ;;  %s33_s6 = sadd.s32 1, %s1355_s16 }
  0x43   : > { %s197_s7 = sand.u32 1, %s1347_s14   ;;  %p35_p6 = scmp.ge.s32.totalorder %s33_s6, 2 }
  0x44   : > { %s905_s8 = sshll.u32 %s197_s7, 7  ;;  %s918_s9 = sshll.u32 %s1355_s16, 11 }
  0x45   : > { %s1777_s6 = smov (%p35_p6, %s33_s6), 0  ;;  %s1533_s4 = scalar_lea.hbm %s1745_s2, %s918_s9 }
  0x46   : > { %s199_s30 = scalar_lea.vmem [#allocation8], %s905_s8  ;;  %s95_s26 = ssub.s32 %s1355_s16, %s1777_s6 }
  0x47   : > { %s207_s27 = sshll.u32 %s199_s30, 4  ;;  %p1539_p2 = scmp.eq.s32.totalorder %s95_s26, 0  ;;  %s1537_s27 = int_to_ptr.vmem [resolvable:$true] %s207_s27 }
  0x48   : > { %s1543_s7 = scalar_lea.sflag [#allocation4], %s195_s5  ;;  %s1239_s20 = scalar_lea.hbm %s1533_s4, 2048 }
  0x49   : > { %p1240_p3 = scmp.ne.s32.totalorder %s1533_s4, %s1239_s20  ;;  %p1760_p7 = scmp.ne.s32.totalorder %s1757_s28, 0 }
  0x4a   : > { %s1244_s10 = scalar_lea.hbm %s1745_s2, 4096  ;;  %p1245_p13 = scmp.lt.u32.totalorder %s1533_s4, %s1745_s2 }
  0x4b   : > { %p1241_p8 = pneg %p1760_p7  ;;  %p1246_p4 = scmp.lt.u32.totalorder %s1244_s10, %s1239_s20 }
  0x4c   : > { %p1248_p10 = scmp.lt.u32.totalorder %s1239_s20, %s1533_s4 }
  0x4d   : > { %p1242_p9 = pnand %p1241_p8, %p1240_p3  ;;  %p1247_p5 = por %p1246_p4, %p1245_p13 }
  0x4f   : > { %p1243_p12 = pneg %p1242_p9  ;;  %p1249_p11 = por %p1248_p10, %p1247_p5 }
  0x51   : > { %p1250_p1 = pnand %p1249_p11, %p1243_p12 }
  0x53   : > { %1253 = shalt.err (!%p1250_p1)
}
  0x54   : > { %s1254_s5 = scalar_lea.vmem %s1537_s27, 2048  ;;  %s1365_s26 = smov [#allocation8]  }
  0x55   : > { %p1255_p0 = scmp.ne.s32.totalorder %s1537_s27, %s1254_s5  ;;  %s1259_s9 = sshll.u32 %s1365_s26, 4  ;;  %s1260_s9 = int_to_ptr.vmem [resolvable:$false] %s1259_s9 }
  0x56   : > { %s1261_s8 = scalar_lea.vmem %s1260_s9, 4096  ;;  %p1262_p9 = scmp.lt.s32.totalorder %s1537_s27, %s1260_s9 }
  0x57   : > { %p1257_p6 = pnand %p1255_p0, %p1241_p8  ;;  %p1263_p13 = scmp.lt.s32.totalorder %s1261_s8, %s1254_s5 }
  0x59   : > { %p1258_p3 = pneg %p1257_p6  ;;  %p1264_p4 = por %p1263_p13, %p1262_p9 }
  0x5b   : > { %p1265_p5 = pnand %p1264_p4, %p1258_p3 }
  0x5d   : > { %1268 = shalt.err (!%p1265_p5)
}
  0x5e   : > { %1117 = dma.hbm_to_vmem [thread:$0]  (!%p1760_p7), %s1533_s4, 2048, %s1537_s27, %s1543_s7, %s1363_s19, %s1363_s19, %s1364_s21  }
  0x5f   : > { %s1761_s20 = sadd.s32 1, %s1347_s14  ;;  %p1762_p8 = scmp.ne.s32.totalorder %s1756_s25, 0 }
  0x60   : > { %s1579_s10 = scalar_select %p1539_p2, %s1347_s14, %s1761_s20  }
  0x61   : > { %219 = sbr.rel (%p1762_p8) target bundleno = 438 (0x1b6), region = 32  ;;  %p1763_p12 = scmp.eq.s32.totalorder (!%p1762_p8), %s1421_s18, 0 }
  0x68   : > { %1322 = dma.done.wait (%p1763_p12), [#allocation4], 16   ;;  %p1764_p10 = pmov %p1763_p12 }
  0x6a   : > { %1324 = vsyncadd (%p1764_p10), [#allocation4], 4294967280  ;;  %p1765_p11 = pmov %p1764_p10 }
  0x6b   : > { %p1766_p1 = pmov %p1764_p10 }
  0x6c   : > { %1326 = dma.done.wait (%p1765_p11), [#allocation7], 4096  }
  0x6d   : > { %1328 = vsyncadd (%p1766_p1), [#allocation7], 4294963200  ;;  %s229_s28 = sand.u32 1, %s1421_s18   ;;  %s1593_s19 = sand.u32 1, %s1343_s13  }
  0x6e   : > { %s911_s25 = sshll.u32 %s1593_s19, 7  ;;  %s230_s21 = scalar_lea.sflag [#allocation4], %s229_s28 }
  0x6f   : > { %s1596_s4 = scalar_lea.vmem [#allocation8], %s911_s25  ;;  %p1767_p2 = scmp.ne.s32.totalorder %s1753_s22, 0 }
  0x71   : > { %1330 = dma.done.wait (%p1767_p2), %s230_s21, 2048  }
  0x72   : > { %1332 = vsyncadd (%p1767_p2), %s230_s21, 4294965248  ;;  %v398_v0 = vld [vmem:[%s1596_s4] sm:$0xff]  ;;  %v399_v1 = vld [vmem:[%s1596_s4 + $0x8] sm:$0xff]  ;;  %s912_s18 = sshll.u32 %s1593_s19, 8  ;;  %s915_s27 = sshll.u32 %s1351_s15, 7 }
  0x73   : > { %v400_v2 = vld [vmem:[%s1596_s4 + $0x10] sm:$0xff]  ;;  %v1047_v3 = vpack.c.bf16 %v399_v1, %v398_v0  ;;  %v401_v4 = vld [vmem:[%s1596_s4 + $0x18] sm:$0xff]  ;;  %v295_v6 = vld [vmem:[#allocation6] sm:$0xff]  ;;  %s1653_s22 = scalar_lea.vmem [#allocation9], %s912_s18  ;;  %s1688_s30 = scalar_lea.hbm %s1746_s3, %s915_s27 }
  0x74   : > { %v1051_v5 = vpack.c.bf16 %v401_v4, %v400_v2  ;;  %v1606_v7 = vld [vmem:[#allocation3] ss:$0 sm:$0xff]  ;;  %v402_v8 = vld [vmem:[%s1596_s4 + $0x20] sm:$0xff]  ;;  %v403_v9 = vld [vmem:[%s1596_s4 + $0x28] sm:$0xff]  ;;  %s786_s29 = sshll.u32 %s1653_s22, 4  ;;  %s771_s15 = scalar_lea.sflag [#allocation5], %s1593_s19  ;;  %s1690_s29 = int_to_ptr.vmem [resolvable:$true] %s786_s29 }
  0x75   : > { %1048 = vmatprep.subr.bf16.mxu0 %v1047_v3  ;;  %1079 = vmatprep.subr.bf16.mxu1 %v1047_v3  ;;  %v334_v10 = vmul.f32 %v1606_v7, %v295_v6  ;;  %v311_v11 = vld [vmem:[#allocation6 + $0x80] sm:$0xff]  ;;  %v1055_v13 = vpack.c.bf16 %v403_v9, %v402_v8  ;;  %v404_v14 = vld [vmem:[%s1596_s4 + $0x30] sm:$0xff]  ;;  %v405_v15 = vld [vmem:[%s1596_s4 + $0x38] sm:$0xff]  ;;  %s1269_s5 = scalar_lea.vmem %s1690_s29, 4096  ;;  %p1768_p0 = scmp.ne.s32.totalorder %s1754_s23, 0 }
  0x76   : > { %1050 = vmatpush3.bf16.xpose.msra.mxu0 %v1047_v3  ;;  %1087 = vmatpush3.bf16.xpose.msra.mxu1 %v1047_v3  ;;  %v350_v12 = vmul.f32 %v1606_v7, %v311_v11  ;;  %v1059_v16 = vpack.c.bf16 %v405_v15, %v404_v14  ;;  %v406_v17 = vld [vmem:[%s1596_s4 + $0x40] sm:$0xff]  ;;  %v407_v18 = vld [vmem:[%s1596_s4 + $0x48] sm:$0xff]  ;;  %v408_v20 = vld [vmem:[%s1596_s4 + $0x50] sm:$0xff]  ;;  %p1270_p7 = scmp.ne.s32.totalorder %s1690_s29, %s1269_s5  ;;  %s1366_s26 = smov [#allocation9]  }
  0x77   : > { %1052 = vmatprep.subr.bf16.mxu0 %v1051_v5  ;;  %1080 = vmatprep.subr.bf16.mxu1 %v1051_v5  ;;  %v1063_v19 = vpack.c.bf16 %v407_v18, %v406_v17  ;;  %v409_v21 = vld [vmem:[%s1596_s4 + $0x58] sm:$0xff]  ;;  %v410_v23 = vld [vmem:[%s1596_s4 + $0x60] sm:$0xff]  ;;  %v411_v24 = vld [vmem:[%s1596_s4 + $0x68] sm:$0xff]  ;;  %s1273_s9 = sshll.u32 %s1366_s26, 4  ;;  %s1274_s9 = int_to_ptr.vmem [resolvable:$false] %s1273_s9 }
  0x78   : > { %999 = vmatprep.mubr.f32.mxu0 %v334_v10  ;;  %1023 = vmatprep.mubr.f32.mxu1 %v350_v12  ;;  %v1067_v22 = vpack.c.bf16 %v409_v21, %v408_v20  ;;  %v1071_v25 = vpack.c.bf16 %v411_v24, %v410_v23  ;;  %v412_v26 = vld [vmem:[%s1596_s4 + $0x70] sm:$0xff]  ;;  %v413_v27 = vld [vmem:[%s1596_s4 + $0x78] sm:$0xff]  ;;  %v296_v29 = vld [vmem:[#allocation6 + $0x8] sm:$0xff]  ;;  %p1271_p6 = pnand %p1270_p7, %p1768_p0  ;;  %s1275_s8 = scalar_lea.vmem %s1274_s9, 8192 }
  0x79   : > { %v1075_v28 = vpack.c.bf16 %v413_v27, %v412_v26  ;;  %v312_v30 = vld [vmem:[#allocation6 + $0x88] sm:$0xff]  ;;  %v297_v31 = vld [vmem:[#allocation6 + $0x10] sm:$0xff]  ;;  %v335_v33 = vmul.f32 %v1606_v7, %v296_v29  ;;  %v298_v37 = vld [vmem:[#allocation6 + $0x18] sm:$0xff]  ;;  %p1276_p9 = scmp.lt.s32.totalorder %s1690_s29, %s1274_s9  ;;  %p1277_p13 = scmp.lt.s32.totalorder %s1275_s8, %s1269_s5 }
  0x7a   : > { %v313_v32 = vld [vmem:[#allocation6 + $0x90] sm:$0xff]  ;;  %v351_v34 = vmul.f32 %v1606_v7, %v312_v30  ;;  %v336_v35 = vmul.f32 %v1606_v7, %v297_v31  ;;  %v314_v38 = vld [vmem:[#allocation6 + $0x98] sm:$0xff]  ;;  %v299_v39 = vld [vmem:[#allocation6 + $0x20] sm:$0xff]  ;;  %v337_v41 = vmul.f32 %v1606_v7, %v298_v37  ;;  %p1272_p3 = pneg %p1271_p6 }
  0x7b   : > { %v352_v36 = vmul.f32 %v1606_v7, %v313_v32  ;;  %v315_v40 = vld [vmem:[#allocation6 + $0xa0] sm:$0xff]  ;;  %v353_v42 = vmul.f32 %v1606_v7, %v314_v38  ;;  %v338_v43 = vmul.f32 %v1606_v7, %v299_v39  ;;  %v300_v45 = vld [vmem:[#allocation6 + $0x28] sm:$0xff]  ;;  %v301_v47 = vld [vmem:[#allocation6 + $0x30] sm:$0xff]  ;;  %p1278_p4 = por %p1277_p13, %p1276_p9 }
  0x7c   : > { %v354_v44 = vmul.f32 %v1606_v7, %v315_v40  ;;  %v316_v46 = vld [vmem:[#allocation6 + $0xa8] sm:$0xff]  ;;  %v317_v48 = vld [vmem:[#allocation6 + $0xb0] sm:$0xff]  ;;  %v339_v49 = vmul.f32 %v1606_v7, %v300_v45  ;;  %v340_v51 = vmul.f32 %v1606_v7, %v301_v47  ;;  %v302_v53 = vld [vmem:[#allocation6 + $0x38] sm:$0xff] }
  0x7d   : > { %v355_v50 = vmul.f32 %v1606_v7, %v316_v46  ;;  %v356_v52 = vmul.f32 %v1606_v7, %v317_v48  ;;  %v318_v54 = vld [vmem:[#allocation6 + $0xb8] sm:$0xff]  ;;  %v303_v55 = vld [vmem:[#allocation6 + $0x40] sm:$0xff]  ;;  %v341_v57 = vmul.f32 %v1606_v7, %v302_v53  ;;  %v304_v61 = vld [vmem:[#allocation6 + $0x48] sm:$0xff]  ;;  %p1279_p5 = pnand %p1278_p4, %p1272_p3 }
  0x7e   : > { %1054 = vmatpush3.bf16.xpose.msra.mxu0 %v1051_v5  ;;  %1088 = vmatpush3.bf16.xpose.msra.mxu1 %v1051_v5  ;;  %v319_v56 = vld [vmem:[#allocation6 + $0xc0] sm:$0xff]  ;;  %v357_v58 = vmul.f32 %v1606_v7, %v318_v54  ;;  %v342_v59 = vmul.f32 %v1606_v7, %v303_v55  ;;  %v320_v62 = vld [vmem:[#allocation6 + $0xc8] sm:$0xff]  ;;  %v305_v63 = vld [vmem:[#allocation6 + $0x50] sm:$0xff]  ;;  %v343_v1 = vmul.f32 %v1606_v7, %v304_v61 }
  0x7f   : > { %1056 = vmatprep.subr.bf16.mxu0 %v1055_v13  ;;  %1081 = vmatprep.subr.bf16.mxu1 %v1055_v13  ;;  %v358_v60 = vmul.f32 %v1606_v7, %v319_v56  ;;  %v321_v0 = vld [vmem:[#allocation6 + $0xd0] sm:$0xff]  ;;  %v359_v2 = vmul.f32 %v1606_v7, %v320_v62  ;;  %v344_v3 = vmul.f32 %v1606_v7, %v305_v63  ;;  %v306_v5 = vld [vmem:[#allocation6 + $0x58] sm:$0xff]  ;;  %v307_v8 = vld [vmem:[#allocation6 + $0x60] sm:$0xff] }
  0x80   : > { %v360_v4 = vmul.f32 %v1606_v7, %v321_v0  ;;  %v322_v6 = vld [vmem:[#allocation6 + $0xd8] sm:$0xff]  ;;  %v323_v9 = vld [vmem:[#allocation6 + $0xe0] sm:$0xff]  ;;  %v345_v10 = vmul.f32 %v1606_v7, %v306_v5  ;;  %v346_v12 = vmul.f32 %v1606_v7, %v307_v8  ;;  %v308_v14 = vld [vmem:[#allocation6 + $0x68] sm:$0xff] }
  0x81   : > { %v361_v11 = vmul.f32 %v1606_v7, %v322_v6  ;;  %v324_v15 = vld [vmem:[#allocation6 + $0xe8] sm:$0xff]  ;;  %v325_v17 = vld [vmem:[#allocation6 + $0xf0] sm:$0xff]  ;;  %v347_v18 = vmul.f32 %v1606_v7, %v308_v14  ;;  %v326_v23 = vld [vmem:[#allocation6 + $0xf8] sm:$0xff] }
  0x82   : > { %v364_v21 = vmul.f32 %v1606_v7, %v325_v17 }
  0x86   : > { %1058 = vmatpush3.bf16.xpose.msra.mxu0 %v1055_v13  ;;  %1089 = vmatpush3.bf16.xpose.msra.mxu1 %v1055_v13  ;;  %v362_v13 = vmul.f32 %v1606_v7, %v323_v9 }
  0x87   : > { %1060 = vmatprep.subr.bf16.mxu0 %v1059_v16  ;;  %1082 = vmatprep.subr.bf16.mxu1 %v1059_v16 }
  0x8e   : > { %1062 = vmatpush3.bf16.xpose.msra.mxu0 %v1059_v16  ;;  %1090 = vmatpush3.bf16.xpose.msra.mxu1 %v1059_v16  ;;  %v309_v16 = vld [vmem:[#allocation6 + $0x70] sm:$0xff] }
  0x8f   : > { %1064 = vmatprep.subr.bf16.mxu0 %v1063_v19  ;;  %1083 = vmatprep.subr.bf16.mxu1 %v1063_v19  ;;  %v348_v20 = vmul.f32 %v1606_v7, %v309_v16 }
  0x96   : > { %1066 = vmatpush3.bf16.xpose.msra.mxu0 %v1063_v19  ;;  %1091 = vmatpush3.bf16.xpose.msra.mxu1 %v1063_v19  ;;  %v363_v19 = vmul.f32 %v1606_v7, %v324_v15 }
  0x97   : > { %1068 = vmatprep.subr.bf16.mxu0 %v1067_v22  ;;  %1084 = vmatprep.subr.bf16.mxu1 %v1067_v22 }
  0x9e   : > { %1070 = vmatpush3.bf16.xpose.msra.mxu0 %v1067_v22  ;;  %1092 = vmatpush3.bf16.xpose.msra.mxu1 %v1067_v22  ;;  %v310_v22 = vld [vmem:[#allocation6 + $0x78] sm:$0xff] }
  0x9f   : > { %1072 = vmatprep.subr.bf16.mxu0 %v1071_v25  ;;  %1085 = vmatprep.subr.bf16.mxu1 %v1071_v25  ;;  %v349_v24 = vmul.f32 %v1606_v7, %v310_v22 }
  0xa6   : > { %1074 = vmatpush3.bf16.xpose.msra.mxu0 %v1071_v25  ;;  %1093 = vmatpush3.bf16.xpose.msra.mxu1 %v1071_v25  ;;  %v365_v25 = vmul.f32 %v1606_v7, %v326_v23 }
  0xa7   : > { %1076 = vmatprep.subr.bf16.mxu0 %v1075_v28  ;;  %1086 = vmatprep.subr.bf16.mxu1 %v1075_v28 }
  0xae   : > { %1078 = vmatpush3.bf16.xpose.msra.mxu0 %v1075_v28  ;;  %1094 = vmatpush3.bf16.xpose.msra.mxu1 %v1075_v28 }
  0xb5   : > { %1000 = vmatmul.mubr.f32.vlgmr.msra.gmra.mrb[0].mxu0 %v335_v33  ;;  %1024 = vmatmul.mubr.f32.vlgmr.msra.gmra.mrb[0].mxu1 %v351_v34 }
  0xb6   : > { %1002 = vmatprep.mubr.f32.mxu0 %v336_v35  ;;  %1026 = vmatprep.mubr.f32.mxu1 %v352_v36 }
  0xb9   : > { %1003 = vmatmul.mubr.f32.gmra.mrb[2].mxu0 %v337_v41  ;;  %1027 = vmatmul.mubr.f32.gmra.mrb[2].mxu1 %v353_v42 }
  0xba   : > { %1005 = vmatprep.mubr.f32.mxu0 %v338_v43  ;;  %1029 = vmatprep.mubr.f32.mxu1 %v354_v44 }
  0xbd   : > { %1006 = vmatmul.mubr.f32.gmra.mrb[4].mxu0 %v339_v49  ;;  %1030 = vmatmul.mubr.f32.gmra.mrb[4].mxu1 %v355_v50 }
  0xbe   : > { %1008 = vmatprep.mubr.f32.mxu0 %v340_v51  ;;  %1032 = vmatprep.mubr.f32.mxu1 %v356_v52 }
  0xc1   : > { %1009 = vmatmul.mubr.f32.gmra.mrb[6].mxu0 %v341_v57  ;;  %1033 = vmatmul.mubr.f32.gmra.mrb[6].mxu1 %v357_v58 }
  0xc2   : > { %1011 = vmatprep.mubr.f32.mxu0 %v342_v59  ;;  %1035 = vmatprep.mubr.f32.mxu1 %v358_v60 }
  0xc5   : > { %1012 = vmatmul.mubr.f32.gmra.mrb[8].mxu0 %v343_v1  ;;  %1036 = vmatmul.mubr.f32.gmra.mrb[8].mxu1 %v359_v2 }
  0xc6   : > { %1014 = vmatprep.mubr.f32.mxu0 %v344_v3  ;;  %1038 = vmatprep.mubr.f32.mxu1 %v360_v4 }
  0xc9   : > { %1015 = vmatmul.mubr.f32.gmra.mrb[10].mxu0 %v345_v10  ;;  %1039 = vmatmul.mubr.f32.gmra.mrb[10].mxu1 %v361_v11 }
  0xca   : > { %1017 = vmatprep.mubr.f32.mxu0 %v346_v12  ;;  %1041 = vmatprep.mubr.f32.mxu1 %v362_v13 }
  0xcd   : > { %1018 = vmatmul.mubr.f32.gmra.mrb[12].mxu0 %v347_v18  ;;  %1042 = vmatmul.mubr.f32.gmra.mrb[12].mxu1 %v363_v19 }
  0xce   : > { %1020 = vmatprep.mubr.f32.mxu0 %v348_v20  ;;  %1044 = vmatprep.mubr.f32.mxu1 %v364_v21 }
  0xd1   : > { %1021 = vmatmul.mubr.f32.gmra.mrb[14].mxu0 %v349_v24  ;;  %1045 = vmatmul.mubr.f32.gmra.mrb[14].mxu1 %v365_v25 }
 0x188   : > { %v1001_v26 = vpop.f32.mrb[0].mxu0  ;;  %v1025_v27 = vpop.f32.mrb[0].mxu1 }
 0x189   : > { %739 = vst [vmem:[%s1653_s22 + $0x8] sm:$0xff] %v1001_v26  ;;  %755 = vst [vmem:[%s1653_s22 + $0x88] sm:$0xff] %v1025_v27  ;;  %v480_v7 = vpop.f32.mrb[1].mxu0  ;;  %v560_v28 = vpop.f32.mrb[1].mxu1 }
 0x18a   : > { %738 = vst [vmem:[%s1653_s22] sm:$0xff] %v480_v7  ;;  %754 = vst [vmem:[%s1653_s22 + $0x80] sm:$0xff] %v560_v28 }
 0x18c   : > { %v1004_v29 = vpop.f32.mrb[2].mxu0  ;;  %v1028_v30 = vpop.f32.mrb[2].mxu1 }
 0x18d   : > { %741 = vst [vmem:[%s1653_s22 + $0x18] sm:$0xff] %v1004_v29  ;;  %757 = vst [vmem:[%s1653_s22 + $0x98] sm:$0xff] %v1028_v30  ;;  %v490_v31 = vpop.f32.mrb[3].mxu0  ;;  %v570_v32 = vpop.f32.mrb[3].mxu1 }
 0x18e   : > { %740 = vst [vmem:[%s1653_s22 + $0x10] sm:$0xff] %v490_v31  ;;  %756 = vst [vmem:[%s1653_s22 + $0x90] sm:$0xff] %v570_v32 }
 0x190   : > { %v1007_v33 = vpop.f32.mrb[4].mxu0  ;;  %v1031_v34 = vpop.f32.mrb[4].mxu1 }
 0x191   : > { %743 = vst [vmem:[%s1653_s22 + $0x28] sm:$0xff] %v1007_v33  ;;  %759 = vst [vmem:[%s1653_s22 + $0xa8] sm:$0xff] %v1031_v34  ;;  %v500_v35 = vpop.f32.mrb[5].mxu0  ;;  %v580_v36 = vpop.f32.mrb[5].mxu1 }
 0x192   : > { %742 = vst [vmem:[%s1653_s22 + $0x20] sm:$0xff] %v500_v35  ;;  %758 = vst [vmem:[%s1653_s22 + $0xa0] sm:$0xff] %v580_v36 }
 0x194   : > { %v1010_v37 = vpop.f32.mrb[6].mxu0  ;;  %v1034_v38 = vpop.f32.mrb[6].mxu1 }
 0x195   : > { %745 = vst [vmem:[%s1653_s22 + $0x38] sm:$0xff] %v1010_v37  ;;  %761 = vst [vmem:[%s1653_s22 + $0xb8] sm:$0xff] %v1034_v38  ;;  %v510_v39 = vpop.f32.mrb[7].mxu0  ;;  %v590_v40 = vpop.f32.mrb[7].mxu1 }
 0x196   : > { %744 = vst [vmem:[%s1653_s22 + $0x30] sm:$0xff] %v510_v39  ;;  %760 = vst [vmem:[%s1653_s22 + $0xb0] sm:$0xff] %v590_v40 }
 0x198   : > { %v1013_v41 = vpop.f32.mrb[8].mxu0  ;;  %v1037_v42 = vpop.f32.mrb[8].mxu1 }
 0x199   : > { %747 = vst [vmem:[%s1653_s22 + $0x48] sm:$0xff] %v1013_v41  ;;  %763 = vst [vmem:[%s1653_s22 + $0xc8] sm:$0xff] %v1037_v42  ;;  %v520_v43 = vpop.f32.mrb[9].mxu0  ;;  %v600_v44 = vpop.f32.mrb[9].mxu1 }
 0x19a   : > { %746 = vst [vmem:[%s1653_s22 + $0x40] sm:$0xff] %v520_v43  ;;  %762 = vst [vmem:[%s1653_s22 + $0xc0] sm:$0xff] %v600_v44 }
 0x19c   : > { %v1016_v45 = vpop.f32.mrb[10].mxu0  ;;  %v1040_v46 = vpop.f32.mrb[10].mxu1 }
 0x19d   : > { %749 = vst [vmem:[%s1653_s22 + $0x58] sm:$0xff] %v1016_v45  ;;  %765 = vst [vmem:[%s1653_s22 + $0xd8] sm:$0xff] %v1040_v46  ;;  %v530_v47 = vpop.f32.mrb[11].mxu0  ;;  %v610_v48 = vpop.f32.mrb[11].mxu1 }
 0x19e   : > { %748 = vst [vmem:[%s1653_s22 + $0x50] sm:$0xff] %v530_v47  ;;  %764 = vst [vmem:[%s1653_s22 + $0xd0] sm:$0xff] %v610_v48 }
 0x1a0   : > { %v1019_v49 = vpop.f32.mrb[12].mxu0  ;;  %v1043_v50 = vpop.f32.mrb[12].mxu1 }
 0x1a1   : > { %751 = vst [vmem:[%s1653_s22 + $0x68] sm:$0xff] %v1019_v49  ;;  %767 = vst [vmem:[%s1653_s22 + $0xe8] sm:$0xff] %v1043_v50  ;;  %v540_v51 = vpop.f32.mrb[13].mxu0  ;;  %v620_v52 = vpop.f32.mrb[13].mxu1 }
 0x1a2   : > { %750 = vst [vmem:[%s1653_s22 + $0x60] sm:$0xff] %v540_v51  ;;  %766 = vst [vmem:[%s1653_s22 + $0xe0] sm:$0xff] %v620_v52 }
 0x1a4   : > { %v1022_v53 = vpop.f32.mrb[14].mxu0  ;;  %v1046_v54 = vpop.f32.mrb[14].mxu1 }
 0x1a5   : > { %753 = vst [vmem:[%s1653_s22 + $0x78] sm:$0xff] %v1022_v53  ;;  %769 = vst [vmem:[%s1653_s22 + $0xf8] sm:$0xff] %v1046_v54  ;;  %v550_v55 = vpop.f32.mrb[15].mxu0  ;;  %v630_v56 = vpop.f32.mrb[15].mxu1 }
 0x1a6   : > { %752 = vst [vmem:[%s1653_s22 + $0x70] sm:$0xff] %v550_v55  ;;  %768 = vst [vmem:[%s1653_s22 + $0xf0] sm:$0xff] %v630_v56 }
 0x1a7   : > { %1282 = shalt.err (!%p1279_p5)
}
 0x1a8   : > { %s1283_s20 = scalar_lea.hbm %s1688_s30, 4096  ;;  %s1287_s21 = scalar_lea.hbm %s1746_s3, 8192 }
 0x1a9   : > { %p1284_p8 = scmp.ne.s32.totalorder %s1688_s30, %s1283_s20  ;;  %p1288_p11 = scmp.lt.u32.totalorder %s1688_s30, %s1746_s3 }
 0x1aa   : > { %p1289_p1 = scmp.lt.u32.totalorder %s1287_s21, %s1283_s20  ;;  %p1291_p7 = scmp.lt.u32.totalorder %s1283_s20, %s1688_s30 }
 0x1ab   : > { %p1285_p12 = pnand %p1284_p8, %p1768_p0 }
 0x1ac   : > { %p1290_p2 = por %p1289_p1, %p1288_p11 }
 0x1ad   : > { %p1286_p10 = pneg %p1285_p12 }
 0x1ae   : > { %p1292_p6 = por %p1291_p7, %p1290_p2 }
 0x1b0   : > { %p1293_p3 = pnand %p1292_p6, %p1286_p10 }
 0x1b2   : > { %1296 = shalt.err (!%p1293_p3)
}
 0x1b3   : > { %s1367_s22 = smov 128   ;;  %s1368_s27 = smov 256  }
 0x1b4   : > { %s1369_s7 = smov 8  }
 0x1b5   : > { %1105 = dma.vmem_to_hbm [thread:$0]  (%p1768_p0), %s1690_s29, 4096, %s1688_s30, %s771_s15, %s1367_s22, %s1368_s27, %s1369_s7  }
 0x1b6 PF: > { %s801_s11 = sand.u32 1, %s1339_s12   ;;  %p1769_p9 = scmp.ne.s32.totalorder %s1755_s24, 0 }
 0x1b7   : > { %p1770_p13 = scmp.ge.s32.totalorder %s1359_s17, 2  ;;  %s802_s5 = scalar_lea.sflag [#allocation5], %s801_s11 }
 0x1b9   : > { %p1119_p4 = pnand %p1770_p13, %p1769_p9 }
 0x1bb   : > { %1334 = dma.done.wait (!%p1119_p4), %s802_s5, 4096  }
 0x1bc   : > { %1336 = vsyncadd (!%p1119_p4), %s802_s5, 4294963200  ;;  %s18_s17 = sadd.s32 1, %s1359_s17   ;;  %s1771_s12 = smov %s1343_s13 }
 0x1bd   : > { %p15_p5 = scmp.ge.s32.totalorder %s18_s17, 4   ;;  %s1772_s13 = smov %s1347_s14 }
 0x1be   : > { %s1773_s14 = smov %s1579_s10  ;;  %s1774_s15 = smov %s1355_s16 }
 0x1bf   : > { %s1775_s16 = smov %s1777_s6  ;;  %17 = sbr.rel (!%p15_p5) target bundleno = 6 (0x6), region = 94 }
 0x1c6   :  { %807 = vsyncpa [#allocation4], 1 }
 0x1c7   :  { %809 = vsyncpa [#allocation4 + $0x1], 1 }
 0x1c8   :  { %810 = vsyncpa [#allocation7], 1 }
 0x1c9   :  { %811 = vsyncpa [#allocation5], 1 }
 0x1ca   :  { %813 = vsyncpa [#allocation5 + $0x1], 1 }

</bundles_post_ra>
